<compile_context>
chip_gen: v7x
topology: tpu7x:2x2x1
jax: 0.10.0
libtpu: 0.0.40
codegen_flags: <defaults>
</compile_context>

<pallas_src>
import jax
import jax.numpy as jnp
from jax.experimental import pallas as pl
from jax.experimental.pallas import tpu as pltpu


# --------------------------------------------------------------------------- #
# Kernels
# --------------------------------------------------------------------------- #
def _fused_kernel(feat_ref, w1t_ref, b1_ref, w2t_ref, b2_ref, wr_ref,
                  out_ref, att_ref):
    """One grid step = B_blk fused batch elements (fully VMEM-resident path).

    feat_ref : (B_blk, C_in, HW)  native dtype (f32/bf16) input features
    w1t_ref  : (C_in, C_mid) f32  la_conv1 1x1 weight, transposed
    b1_ref   : (1, C_mid)    f32  la_conv1 bias (row)
    w2t_ref  : (C_mid, C_in) f32  (E @ la_conv2 weight)^T (expansion folded)
    b2_ref   : (1, C_in)     f32  E @ la_conv2 bias (row)
    wr_ref   : (FC, C_in)    f32  reduction_conv 1x1 weight
    out_ref  : (B_blk, FC, HW)    output (out_dtype)
    att_ref  : (B_blk, C_in) f32  scratch: per-batch layer attention
    """
    b_blk, c_in, hw = feat_ref.shape

    # Global average pool with f32 accumulation; no full-tile dtype copy.
    avg = jnp.sum(feat_ref[...], axis=2, dtype=jnp.float32) * (1.0 / hw)

    # Layer-attention MLP (1x1 convs on a 1x1 map == row-vector matmuls).
    hid = jnp.dot(avg, w1t_ref[...], preferred_element_type=jnp.float32)
    hid = jnp.maximum(hid + b1_ref[...], 0.0)                   # (B_blk, C_mid)
    att = jnp.dot(hid, w2t_ref[...], preferred_element_type=jnp.float32)
    # Expansion E is folded into w2t/b2 (exact because E rows are one-hot).
    att_ref[...] = jax.nn.sigmoid(att + b2_ref[...])            # (B_blk, C_in)

    def _one(i):
        # Scale the SMALL reduction weight, not the big activation.
        att_i = att_ref[pl.ds(i, 1), :]                         # (1, C_in) f32
        w_i = (wr_ref[...] * att_i).astype(feat_ref.dtype)      # (FC, C_in)
        o = jnp.dot(w_i, feat_ref[i],
                    preferred_element_type=jnp.float32)         # (FC, HW) f32
        # ConvModule default activation = ReLU (norm_cfg is None -> no norm).
        out_ref[i] = jnp.maximum(o, 0.0).astype(out_ref.dtype)

    if b_blk <= 2:                       # tiny fuse: static loop
        for i in range(b_blk):
            _one(i)
    else:                                # bigger fuse: bounded live ranges
        def body(i, carry):
            _one(i)
            return carry
        jax.lax.fori_loop(0, b_blk, body, 0,
                          unroll=True if b_blk <= 8 else 4)


def _tiled_kernel(att_ref, feat_ref, wr_ref, out_ref):
    """HW-tiled fail-safe path (attention precomputed). grid = (batch, HW tiles).

    att_ref  : (B, C_in)       f32  per-batch layer attention (full array)
    feat_ref : (1, C_in, HW_t)      input features tile (native dtype)
    wr_ref   : (FC, C_in)      f32  reduction_conv 1x1 weight
    out_ref  : (1, FC, HW_t)        output tile (out_dtype)
    """
    b_idx = pl.program_id(0)
    att_row = att_ref[pl.ds(b_idx, 1), :]                       # (1, C_in)
    w = (wr_ref[...] * att_row).astype(feat_ref.dtype)          # (FC, C_in)
    o = jnp.dot(w, feat_ref[0], preferred_element_type=jnp.float32)
    out_ref[0] = jnp.maximum(o, 0.0).astype(out_ref.dtype)


# --------------------------------------------------------------------------- #
# Generation-aware sizing heuristics
# --------------------------------------------------------------------------- #
def _vmem_capacity_bytes():
    try:
        cap = int(pltpu.get_tpu_info().vmem_capacity_bytes)
        if cap > 0:
            return cap
    except Exception:
        pass
    return 64 * 1024 * 1024        # conservative fallback: v7x per-TC VMEM


def _num_tensorcores():
    # Only v7x has 2 TensorCores per chip that megacore-shard the grid.
    try:
        kind = jax.devices()[0].device_kind.lower()
        if "v7" in kind:
            return 2
    except Exception:
        pass
    return 1


def _choose_batch_block(b, per_batch_bytes, budget_bytes, num_cores,
                        max_fuse=16):
    """Largest divisor of b (<= max_fuse) whose footprint fits the budget.
    Keeps >= 2 grid steps only on multi-TensorCore chips (v7x).  Returns 0 if
    even one batch does not fit (caller falls back to the HW-tiled path)."""
    best = 0
    for cand in range(1, min(b, max_fuse) + 1):
        if b % cand:
            continue
        if cand * per_batch_bytes > budget_bytes:
            break
        if num_cores >= 2 and b >= 2 and (b // cand) < 2:
            continue
        best = cand
    return best


def _choose_hw_tile(hw, per_col_bytes, budget_bytes):
    """Largest lane-aligned (multiple-of-128) HW tile that fits the budget."""
    if hw <= 128:
        return hw
    cols = max(128, int(budget_bytes // max(per_col_bytes, 1)))
    tile = max(128, (cols // 128) * 128)
    hw_floor = max(128, (hw // 128) * 128)
    return int(min(tile, hw_floor))


def _vmem_limit_bytes(footprint_bytes, capacity_bytes):
    limit = max(int(footprint_bytes) + (4 << 20), 32 << 20)
    return int(min(limit, int(capacity_bytes * 0.9)))


# --------------------------------------------------------------------------- #
# Wrapper
# --------------------------------------------------------------------------- #
def task_decomposition(feat, params, out_dtype=jnp.bfloat16,
                       force_hw_tiled=False, hw_tile=None):
    """feat: (b, C_in, h, w) NCHW (f32 or bf16). Returns (b, FC, h, w) out_dtype."""
    w1, b1, w2, b2, wr = (params["la_conv1_w"], params["la_conv1_b"],
                          params["la_conv2_w"], params["la_conv2_b"],
                          params["reduction_w"])
    b, c_in, h, w_sp = feat.shape
    c_mid = w1.shape[0]
    s = w2.shape[0]
    fc = wr.shape[0]
    hw = h * w_sp

    # Flatten spatial only — NO dtype cast here (kernel streams native dtype).
    feat2d = feat.reshape(b, c_in, hw)

    w1m = w1.reshape(c_mid, c_in).astype(jnp.float32)
    w2m = w2.reshape(s, c_mid).astype(jnp.float32)
    wrm = wr.reshape(fc, c_in).astype(jnp.float32)

    # One-hot expansion E[c, s] = (c // FC == s), folded into la_conv2 at trace
    # time.  Exact ONLY because each row of E is one-hot (selection commutes
    # with the elementwise sigmoid); revisit if E ever becomes soft weights.
    expand = (jnp.arange(c_in)[:, None] // fc ==
              jnp.arange(s)[None, :]).astype(jnp.float32)          # (C_in, S)
    w2t_full = (expand @ w2m).T                                    # (C_mid, C_in)
    b2_row = (expand @ b2.astype(jnp.float32)).reshape(1, c_in)
    w1t = w1m.T                                                    # (C_in, C_mid)
    b1_row = b1.reshape(1, c_mid).astype(jnp.float32)

    in_bytes = feat.dtype.itemsize
    out_bytes = jnp.dtype(out_dtype).itemsize
    cap = _vmem_capacity_bytes()
    budget = int(cap * 0.75)
    # Constant weights (double-buffered by BlockSpec) + one live f32 result.
    weight_bytes = 2 * 4 * (2 * c_in * c_mid + c_mid + c_in + fc * c_in)
    fixed_bytes = weight_bytes + fc * hw * 4
    tile_budget = max(budget - fixed_bytes, 0)

    # Per fused batch: double-buffered feat in + out + att scratch row.
    per_batch = (2 * c_in * hw * in_bytes + 2 * fc * hw * out_bytes
                 + c_in * 4)

    b_blk = 0
    if not force_hw_tiled:
        b_blk = _choose_batch_block(b, per_batch, tile_budget,
                                    _num_tensorcores())

    if b_blk > 0:
        # ------------------------- fused path ------------------------------ #
        footprint = b_blk * per_batch + fixed_bytes
        out = pl.pallas_call(
            _fused_kernel,
            out_shape=jax.ShapeDtypeStruct((b, fc, hw), out_dtype),
            grid=(b // b_blk,),
            in_specs=[
                pl.BlockSpec((b_blk, c_in, hw), lambda i: (i, 0, 0)),  # feat
                pl.BlockSpec((c_in, c_mid), lambda i: (0, 0)),         # W1^T
                pl.BlockSpec((1, c_mid), lambda i: (0, 0)),            # b1
                pl.BlockSpec((c_mid, c_in), lambda i: (0, 0)),         # (E W2)^T
                pl.BlockSpec((1, c_in), lambda i: (0, 0)),             # E b2
                pl.BlockSpec((fc, c_in), lambda i: (0, 0)),            # Wr
            ],
            out_specs=pl.BlockSpec((b_blk, fc, hw), lambda i: (i, 0, 0)),
            scratch_shapes=[pltpu.VMEM((b_blk, c_in), jnp.float32)],
            compiler_params=pltpu.CompilerParams(
                dimension_semantics=("parallel",),
                vmem_limit_bytes=_vmem_limit_bytes(footprint, cap)),
        )(feat2d, w1t, b1_row, w2t_full, b2_row, wrm)
    else:
        # --------------------- HW-tiled fail-safe path --------------------- #
        # Decouple the (tiny) layer attention so the big reduction matmul can
        # tile HW; costs one extra streamed read of feat for the pooled mean,
        # which is the price of fitting small VMEM (e.g. v7x, large HW).
        avg = jnp.mean(feat2d.astype(jnp.float32), axis=2)             # (b, C_in)
        hid = jax.nn.relu(avg @ w1t + b1_row)
        att = jax.nn.sigmoid(hid @ w2t_full + b2_row)                  # (b, C_in)

        per_col = 2 * c_in * in_bytes + 2 * fc * out_bytes + fc * 4
        tile = hw_tile if hw_tile is not None else _choose_hw_tile(
            hw, per_col, tile_budget)
        n_hw = pl.cdiv(hw, tile)
        footprint = per_col * tile + weight_bytes + 2 * b * c_in * 4
        out = pl.pallas_call(
            _tiled_kernel,
            out_shape=jax.ShapeDtypeStruct((b, fc, hw), out_dtype),
            grid=(b, n_hw),
            in_specs=[
                pl.BlockSpec((b, c_in), lambda i, j: (0, 0)),          # att
                pl.BlockSpec((1, c_in, tile), lambda i, j: (i, 0, j)),  # feat
                pl.BlockSpec((fc, c_in), lambda i, j: (0, 0)),         # Wr
            ],
            out_specs=pl.BlockSpec((1, fc, tile), lambda i, j: (i, 0, j)),
            compiler_params=pltpu.CompilerParams(
                dimension_semantics=("parallel", "parallel"),
                vmem_limit_bytes=_vmem_limit_bytes(footprint, cap)),
        )(att, feat2d, wrm)

    return out.reshape(b, fc, h, w_sp)


# --------------------------------------------------------------------------- #
# Pure-JAX reference (f32) for correctness
# --------------------------------------------------------------------------- #
def reference_jax(feat, params):
    w1, b1, w2, b2, wr = (params["la_conv1_w"], params["la_conv1_b"],
                          params["la_conv2_w"], params["la_conv2_b"],
                          params["reduction_w"])
    b, c_in, h, w = feat.shape
    c_mid = w1.shape[0]
    s = w2.shape[0]
    fc = wr.shape[0]
    avg = jnp.mean(feat, axis=(2, 3))                                # (b, C_in)
    hid = jax.nn.relu(avg @ w1.reshape(c_mid, c_in).T + b1)          # (b, C_mid)
    att = jax.nn.sigmoid(hid @ w2.reshape(s, c_mid).T + b2)          # (b, S)
    conv_w = att[:, None, :, None] * wr.reshape(1, fc, s, fc)        # (b,FC,S,FC)
    conv_w = conv_w.reshape(b, fc, c_in)
    out = jnp.einsum("bfc,bcp->bfp", conv_w, feat.reshape(b, c_in, h * w))
    return jax.nn.relu(out).reshape(b, fc, h, w)


if __name__ == "__main__":
    # Module hyper-parameters (small but TPU-tile friendly).
    feat_channels = 32
    stacked_convs = 4
    la_down_rate = 8
    in_channels = feat_channels * stacked_convs          # 128
    mid_channels = in_channels // la_down_rate           # 16

    key = jax.random.PRNGKey(0)
    k_feat, k_feat8, k1, k2, k3 = jax.random.split(key, 5)

    # Deterministic parameter init mirroring init_weights():
    #   la_conv1: normal(std=0.001), bias 0; la_conv2: normal(std=0.001), bias 0
    #   reduction_conv.conv: normal(std=0.01)  (bias unused in forward)
    params = {
        "la_conv1_w": 0.001 * jax.random.normal(
            k1, (mid_channels, in_channels, 1, 1), jnp.float32),
        "la_conv1_b": jnp.zeros((mid_channels,), jnp.float32),
        "la_conv2_w": 0.001 * jax.random.normal(
            k2, (stacked_convs, mid_channels, 1, 1), jnp.float32),
        "la_conv2_b": jnp.zeros((stacked_convs,), jnp.float32),
        "reduction_w": 0.01 * jax.random.normal(
            k3, (feat_channels, in_channels, 1, 1), jnp.float32),
    }

    def check(out, ref, tag):
        assert out.shape == ref.shape, (tag, out.shape, ref.shape)
        err = float(jnp.max(jnp.abs(out.astype(jnp.float32) - ref)))
        # Tolerance accounts for bf16 output + MXU bf16-precision matmuls
        # (accumulation in f32).
        assert jnp.allclose(out.astype(jnp.float32), ref,
                            rtol=2e-2, atol=1e-2), (tag, err)

    # Case 1: small batch through the fused (fully VMEM-resident) path.
    batch, h, w = 2, 16, 16                              # HW = 256 lanes
    feat = jax.random.normal(k_feat, (batch, in_channels, h, w), jnp.float32)
    ref = jax.block_until_ready(reference_jax(feat, params))
    out = jax.block_until_ready(task_decomposition(feat, params))
    check(out, ref, "fused_b2")

    # Case 2: same inputs through the HW-tiled fail-safe path (forced).
    out_t = jax.block_until_ready(
        task_decomposition(feat, params, force_hw_tiled=True, hw_tile=128))
    check(out_t, ref, "hw_tiled")

    # Case 3: larger batch to exercise batch fusion + the fori_loop body.
    feat8 = jax.random.normal(k_feat8, (8, in_channels, h, w), jnp.float32)
    ref8 = jax.block_until_ready(reference_jax(feat8, params))
    out8 = jax.block_until_ready(task_decomposition(feat8, params))
    check(out8, ref8, "fused_b8")

    print("KERNEL_OK")
</pallas_src>

<mosaic_0001>
module attributes {stable_mosaic.version = 11 : i64} {
  func.func @_fused_kernel(%arg0: i32, %arg1: memref<2x128x256xf32, #tpu.memory_space<vmem>>, %arg2: memref<128x16xf32, #tpu.memory_space<vmem>>, %arg3: memref<1x16xf32, #tpu.memory_space<vmem>>, %arg4: memref<16x128xf32, #tpu.memory_space<vmem>>, %arg5: memref<1x128xf32, #tpu.memory_space<vmem>>, %arg6: memref<32x128xf32, #tpu.memory_space<vmem>>, %arg7: memref<2x32x256xbf16, #tpu.memory_space<vmem>>, %arg8: memref<2x128xf32, #tpu.memory_space<vmem>>) attributes {dimension_semantics = [#tpu.dimension_semantics<parallel>], iteration_bounds = array<i64: 1>, scalar_prefetch = 0 : i64, scratch_operands = 1 : i64, tpu.core_type = #tpu.core_type<tc>, window_params = [{transform_indices = @transform_0, window_bounds = array<i64: 2, 128, 256>}, {pipeline_mode = #tpu.pipeline_mode<synchronous>, transform_indices = @transform_1, window_bounds = array<i64: 128, 16>}, {pipeline_mode = #tpu.pipeline_mode<synchronous>, transform_indices = @transform_2, window_bounds = array<i64: 1, 16>}, {pipeline_mode = #tpu.pipeline_mode<synchronous>, transform_indices = @transform_3, window_bounds = array<i64: 16, 128>}, {pipeline_mode = #tpu.pipeline_mode<synchronous>, transform_indices = @transform_4, window_bounds = array<i64: 1, 128>}, {pipeline_mode = #tpu.pipeline_mode<synchronous>, transform_indices = @transform_5, window_bounds = array<i64: 32, 128>}, {transform_indices = @transform_6, window_bounds = array<i64: 2, 32, 256>}]} {
    %c0 = arith.constant 0 : index
    %c0_0 = arith.constant 0 : index
    %c0_1 = arith.constant 0 : index
    %0 = vector.load %arg1[%c0, %c0_0, %c0_1] : memref<2x128x256xf32, #tpu.memory_space<vmem>>, vector<2x128x256xf32>
    %cst = arith.constant dense<0.000000e+00> : vector<2x128xf32>
    %1 = vector.multi_reduction <add>, %0, %cst [2] : vector<2x128x256xf32> to vector<2x128xf32>
    %cst_2 = arith.constant 3.906250e-03 : f32
    %2 = vector.broadcast %cst_2 : f32 to vector<2x128xf32>
    %3 = arith.mulf %1, %2 : vector<2x128xf32>
    %c0_3 = arith.constant 0 : index
    %c0_4 = arith.constant 0 : index
    %4 = vector.load %arg2[%c0_3, %c0_4] : memref<128x16xf32, #tpu.memory_space<vmem>>, vector<128x16xf32>
    %cst_5 = arith.constant dense<0.000000e+00> : vector<2x16xf32>
    %5 = tpu.matmul %3, %4, %cst_5 {dimension_numbers = #tpu.dot_dimension_numbers<[1], [0], [0], [1], [0, 0, 1, 1], [], []>} : vector<2x128xf32>, vector<128x16xf32>, vector<2x16xf32> -> vector<2x16xf32>
    %c0_6 = arith.constant 0 : index
    %c0_7 = arith.constant 0 : index
    %6 = vector.load %arg3[%c0_6, %c0_7] : memref<1x16xf32, #tpu.memory_space<vmem>>, vector<1x16xf32>
    %7 = vector.broadcast %6 : vector<1x16xf32> to vector<2x16xf32>
    %8 = arith.addf %5, %7 : vector<2x16xf32>
    %cst_8 = arith.constant 0.000000e+00 : f32
    %9 = vector.broadcast %cst_8 : f32 to vector<2x16xf32>
    %10 = arith.maximumf %8, %9 : vector<2x16xf32>
    %c0_9 = arith.constant 0 : index
    %c0_10 = arith.constant 0 : index
    %11 = vector.load %arg4[%c0_9, %c0_10] : memref<16x128xf32, #tpu.memory_space<vmem>>, vector<16x128xf32>
    %cst_11 = arith.constant dense<0.000000e+00> : vector<2x128xf32>
    %12 = tpu.matmul %10, %11, %cst_11 {dimension_numbers = #tpu.dot_dimension_numbers<[1], [0], [0], [1], [0, 0, 1, 1], [], []>} : vector<2x16xf32>, vector<16x128xf32>, vector<2x128xf32> -> vector<2x128xf32>
    %c0_12 = arith.constant 0 : index
    %c0_13 = arith.constant 0 : index
    %13 = vector.load %arg5[%c0_12, %c0_13] : memref<1x128xf32, #tpu.memory_space<vmem>>, vector<1x128xf32>
    %14 = vector.broadcast %13 : vector<1x128xf32> to vector<2x128xf32>
    %15 = arith.addf %12, %14 : vector<2x128xf32>
    %16 = arith.negf %15 : vector<2x128xf32>
    %17 = math.exp %16 : vector<2x128xf32>
    %cst_14 = arith.constant 1.000000e+00 : f32
    %18 = vector.broadcast %cst_14 : f32 to vector<2x128xf32>
    %19 = arith.addf %18, %17 : vector<2x128xf32>
    %20 = arith.divf %18, %19 : vector<2x128xf32>
    %c0_15 = arith.constant 0 : index
    %c0_16 = arith.constant 0 : index
    %21 = vector.load %arg8[%c0_15, %c0_16] : memref<2x128xf32, #tpu.memory_space<vmem>>, vector<2x128xf32>
    tpu.vector_store %arg8[%c0_15, %c0_16], %20 {strides = array<i32>} : memref<2x128xf32, #tpu.memory_space<vmem>>, vector<2x128xf32>,
    %c0_17 = arith.constant 0 : index
    %c0_18 = arith.constant 0 : index
    %22 = vector.load %arg8[%c0_17, %c0_18] : memref<2x128xf32, #tpu.memory_space<vmem>>, vector<1x128xf32>
    %c0_19 = arith.constant 0 : index
    %c0_20 = arith.constant 0 : index
    %23 = vector.load %arg6[%c0_19, %c0_20] : memref<32x128xf32, #tpu.memory_space<vmem>>, vector<32x128xf32>
    %24 = vector.broadcast %22 : vector<1x128xf32> to vector<32x128xf32>
    %25 = arith.mulf %23, %24 : vector<32x128xf32>
    %c0_21 = arith.constant 0 : index
    %c0_22 = arith.constant 0 : index
    %c0_23 = arith.constant 0 : index
    %26 = vector.load %arg1[%c0_21, %c0_22, %c0_23] : memref<2x128x256xf32, #tpu.memory_space<vmem>>, vector<1x128x256xf32>
    %27 = vector.shape_cast %26 : vector<1x128x256xf32> to vector<128x256xf32>
    %cst_24 = arith.constant dense<0.000000e+00> : vector<32x256xf32>
    %28 = tpu.matmul %25, %27, %cst_24 {dimension_numbers = #tpu.dot_dimension_numbers<[1], [0], [0], [1], [0, 0, 1, 1], [], []>} : vector<32x128xf32>, vector<128x256xf32>, vector<32x256xf32> -> vector<32x256xf32>
    %cst_25 = arith.constant 0.000000e+00 : f32
    %29 = vector.broadcast %cst_25 : f32 to vector<32x256xf32>
    %30 = arith.maximumf %28, %29 : vector<32x256xf32>
    %31 = arith.truncf %30 : vector<32x256xf32> to vector<32x256xbf16>
    %c0_26 = arith.constant 0 : index
    %c0_27 = arith.constant 0 : index
    %c0_28 = arith.constant 0 : index
    %32 = vector.load %arg7[%c0_26, %c0_27, %c0_28] : memref<2x32x256xbf16, #tpu.memory_space<vmem>>, vector<1x32x256xbf16>
    %33 = vector.shape_cast %32 : vector<1x32x256xbf16> to vector<32x256xbf16>
    %34 = vector.shape_cast %31 : vector<32x256xbf16> to vector<1x32x256xbf16>
    tpu.vector_store %arg7[%c0_26, %c0_27, %c0_28], %34 {strides = array<i32>} : memref<2x32x256xbf16, #tpu.memory_space<vmem>>, vector<1x32x256xbf16>,
    %c1 = arith.constant 1 : index
    %c0_29 = arith.constant 0 : index
    %35 = vector.load %arg8[%c1, %c0_29] : memref<2x128xf32, #tpu.memory_space<vmem>>, vector<1x128xf32>
    %c0_30 = arith.constant 0 : index
    %c0_31 = arith.constant 0 : index
    %36 = vector.load %arg6[%c0_30, %c0_31] : memref<32x128xf32, #tpu.memory_space<vmem>>, vector<32x128xf32>
    %37 = vector.broadcast %35 : vector<1x128xf32> to vector<32x128xf32>
    %38 = arith.mulf %36, %37 : vector<32x128xf32>
    %c1_32 = arith.constant 1 : index
    %c0_33 = arith.constant 0 : index
    %c0_34 = arith.constant 0 : index
    %39 = vector.load %arg1[%c1_32, %c0_33, %c0_34] : memref<2x128x256xf32, #tpu.memory_space<vmem>>, vector<1x128x256xf32>
    %40 = vector.shape_cast %39 : vector<1x128x256xf32> to vector<128x256xf32>
    %cst_35 = arith.constant dense<0.000000e+00> : vector<32x256xf32>
    %41 = tpu.matmul %38, %40, %cst_35 {dimension_numbers = #tpu.dot_dimension_numbers<[1], [0], [0], [1], [0, 0, 1, 1], [], []>} : vector<32x128xf32>, vector<128x256xf32>, vector<32x256xf32> -> vector<32x256xf32>
    %cst_36 = arith.constant 0.000000e+00 : f32
    %42 = vector.broadcast %cst_36 : f32 to vector<32x256xf32>
    %43 = arith.maximumf %41, %42 : vector<32x256xf32>
    %44 = arith.truncf %43 : vector<32x256xf32> to vector<32x256xbf16>
    %c1_37 = arith.constant 1 : index
    %c0_38 = arith.constant 0 : index
    %c0_39 = arith.constant 0 : index
    %45 = vector.load %arg7[%c1_37, %c0_38, %c0_39] : memref<2x32x256xbf16, #tpu.memory_space<vmem>>, vector<1x32x256xbf16>
    %46 = vector.shape_cast %45 : vector<1x32x256xbf16> to vector<32x256xbf16>
    %47 = vector.shape_cast %44 : vector<32x256xbf16> to vector<1x32x256xbf16>
    tpu.vector_store %arg7[%c1_37, %c0_38, %c0_39], %47 {strides = array<i32>} : memref<2x32x256xbf16, #tpu.memory_space<vmem>>, vector<1x32x256xbf16>,
    return
  }
  func.func @transform_0(%arg0: i32) -> (i32, i32, i32) {
    %c0_i32 = arith.constant 0 : i32
    %c0_i32_0 = arith.constant 0 : i32
    %c0_i32_1 = arith.constant 0 : i32
    return %arg0, %c0_i32, %c0_i32_0 : i32, i32, i32
  }
  func.func @transform_1(%arg0: i32) -> (i32, i32) {
    %c0_i32 = arith.constant 0 : i32
    %c0_i32_0 = arith.constant 0 : i32
    %c0_i32_1 = arith.constant 0 : i32
    return %c0_i32, %c0_i32_0 : i32, i32
  }
  func.func @transform_2(%arg0: i32) -> (i32, i32) {
    %c0_i32 = arith.constant 0 : i32
    %c0_i32_0 = arith.constant 0 : i32
    %c0_i32_1 = arith.constant 0 : i32
    return %c0_i32, %c0_i32_0 : i32, i32
  }
  func.func @transform_3(%arg0: i32) -> (i32, i32) {
    %c0_i32 = arith.constant 0 : i32
    %c0_i32_0 = arith.constant 0 : i32
    %c0_i32_1 = arith.constant 0 : i32
    return %c0_i32, %c0_i32_0 : i32, i32
  }
  func.func @transform_4(%arg0: i32) -> (i32, i32) {
    %c0_i32 = arith.constant 0 : i32
    %c0_i32_0 = arith.constant 0 : i32
    %c0_i32_1 = arith.constant 0 : i32
    return %c0_i32, %c0_i32_0 : i32, i32
  }
  func.func @transform_5(%arg0: i32) -> (i32, i32) {
    %c0_i32 = arith.constant 0 : i32
    %c0_i32_0 = arith.constant 0 : i32
    %c0_i32_1 = arith.constant 0 : i32
    return %c0_i32, %c0_i32_0 : i32, i32
  }
  func.func @transform_6(%arg0: i32) -> (i32, i32, i32) {
    %c0_i32 = arith.constant 0 : i32
    %c0_i32_0 = arith.constant 0 : i32
    %c0_i32_1 = arith.constant 0 : i32
    return %arg0, %c0_i32, %c0_i32_0 : i32, i32, i32
  }
}

</mosaic_0001>

<bundles_post_ra>
// kernel: tpu_custom_call.1
= control target key start
LH: loop header
LB: loop body
LE: loop exit
PB: predicated region body
PF: predicated region fallthrough
CT: control target
= control target key end

     0   :  { %11 = vsyncpa [#allocation4], 0  ;;  %s1833_s0 = inlined_call_operand.hbm [shape: f32[2,128,256], index: 0, kind: input, shape index: {}]   ;;  %s1834_s1 = inlined_call_operand.vmem [shape: f32[128,16], index: 1, kind: input, shape index: {}]   ;;  %s1835_s2 = inlined_call_operand.vmem [shape: f32[1,16], index: 2, kind: input, shape index: {}]   ;;  %s1836_s3 = inlined_call_operand.vmem [shape: f32[16,128], index: 3, kind: input, shape index: {}]   ;;  %s1837_s4 = inlined_call_operand.vmem [shape: f32[1,128], index: 4, kind: input, shape index: {}]   ;;  %s1838_s5 = inlined_call_operand.vmem [shape: f32[32,128], index: 5, kind: input, shape index: {}]   ;;  %s1839_s6 = inlined_call_operand.hbm [shape: bf16[2,32,256], index: 6, kind: output, shape index: {}]  }
   0x1   :  { %12 = vsyncpa [#allocation5], 0  ;;  %s1250_s21 = smov [#allocation3]   ;;  %s1202_s25 = scalar_lea.hbm %s1833_s0, 8192 }
   0x2   :  { %s18_s22 = sshll.u32 %s1250_s21, 4  ;;  %p1203_p0 = scmp.ne.s32.totalorder %s1833_s0, %s1202_s25  ;;  %s19_s22 = int_to_ptr.vmem [resolvable:$true] %s18_s22 }
   0x3   :  { %p1206_p1 = scmp.lt.u32.totalorder %s1202_s25, %s1833_s0 }
   0x5   :  { %p1208_p2 = pnand %p1206_p1, %p1203_p0 }
   0x7   :  { %1211 = shalt.err (!%p1208_p2)
}
   0x8   :  { %s1212_s30 = scalar_lea.vmem %s19_s22, 8192  ;;  %p1217_p4 = scmp.lt.s32.totalorder %s19_s22, %s19_s22 }
   0x9   :  { %p1213_p3 = scmp.ne.s32.totalorder %s19_s22, %s1212_s30  ;;  %p1218_p5 = scmp.lt.s32.totalorder %s1212_s30, %s1212_s30 }
   0xb   :  { %p1219_p6 = por %p1218_p5, %p1217_p4 }
   0xd   :  { %p1220_p7 = pnand %p1219_p6, %p1213_p3 }
   0xf   :  { %1223 = shalt.err (!%p1220_p7)
}
  0x10   :  { %s1251_s7 = smov 256   ;;  %s1252_s8 = smov 16  }
  0x11   :  { %24 = dma.hbm_to_vmem [thread:$0]  %s1833_s0, 8192, %s19_s22, [#allocation4], %s1251_s7, %s1251_s7, %s1252_s8  }
  0x12   :  { %1246 = dma.done.wait [#allocation4], 8192  }
  0x13   :  { %1247 = vsyncadd [#allocation4], 4294959104  ;;  %v1306_v0 = vld [vmem:[#allocation3 + $0x100] sm:$0xff]  ;;  %v1308_v1 = vld [vmem:[#allocation3 + $0x108] sm:$0xff]  ;;  %vm1254_vm0 = vmmov 0   ;;  %vm296_vm1 = vcmask 130112  }
  0x14   :  { %v1310_v2 = vld [vmem:[#allocation3] sm:$0xff]  ;;  %v150_v3 = vadd.f32 %v1308_v1, %v1306_v0  ;;  %v1314_v4 = vld [vmem:[#allocation3 + $0x8] sm:$0xff]  ;;  %v1316_v5 = vld [vmem:[#allocation3 + $0x110] sm:$0xff]  ;;  %vm303_vm2 = vcmask 195712   ;;  %vm310_vm3 = vcmask 261312   ;;  %vm317_vm4 = vcmask 326912  }
  0x15   :  { %v1318_v6 = vld [vmem:[#allocation3 + $0x118] sm:$0xff]  ;;  %v102_v7 = vadd.f32 %v1314_v4, %v1310_v2  ;;  %v1322_v8 = vld [vmem:[#allocation3 + $0x10] sm:$0xff]  ;;  %v1330_v12 = vld [vmem:[#allocation3 + $0x120] sm:$0xff]  ;;  %vm324_vm5 = vcmask 392512   ;;  %vm331_vm6 = vcmask 458112   ;;  %vm338_vm7 = vcmask 523712  }
  0x16   :  { %v1324_v9 = vld [vmem:[#allocation3 + $0x18] sm:$0xff]  ;;  %151 = vadd.xlane.f32.xlu1 %v150_v3  ;;  %v153_v10 = vadd.f32 %v1318_v6, %v1316_v5  ;;  %1894 = vst [vmem:[#allocation9_spill] sm:$0xff] %v1330_v12  ;;  %v1332_v13 = vld [vmem:[#allocation3 + $0x128] sm:$0xff]  ;;  %v1334_v14 = vld [vmem:[#allocation3 + $0x20] sm:$0xff]  ;;  %vm345_vm8 = vcmask 589312   ;;  %vm352_vm9 = vcmask 654912  }
  0x17   :  { %103 = vadd.xlane.f32.xlu0 %v102_v7  ;;  %v105_v11 = vadd.f32 %v1324_v9, %v1322_v8  ;;  %1895 = vst [vmem:[#allocation10_spill] sm:$0xff] %v1332_v13  ;;  %v1336_v15 = vld [vmem:[#allocation3 + $0x28] sm:$0xff]  ;;  %v156_v16 = vadd.f32 %v1332_v13, %v1330_v12  ;;  %v1342_v18 = vld [vmem:[#allocation3 + $0x130] sm:$0xff]  ;;  %v1344_v19 = vld [vmem:[#allocation3 + $0x138] sm:$0xff]  ;;  %vm359_vm10 = vcmask 720512   ;;  %vm366_vm11 = vcmask 786112  }
  0x18   :  { %v108_v17 = vadd.f32 %v1336_v15, %v1334_v14  ;;  %1896 = vst [vmem:[#allocation11_spill] sm:$0xff] %v1342_v18  ;;  %1897 = vst [vmem:[#allocation12_spill] sm:$0xff] %v1344_v19  ;;  %v1346_v20 = vld [vmem:[#allocation3 + $0x30] sm:$0xff]  ;;  %v1348_v21 = vld [vmem:[#allocation3 + $0x38] sm:$0xff]  ;;  %v159_v22 = vadd.f32 %v1344_v19, %v1342_v18  ;;  %vm373_vm12 = vcmask 851712   ;;  %vm380_vm13 = vcmask 917312  }
  0x19   :  { %v111_v23 = vadd.f32 %v1348_v21, %v1346_v20  ;;  %v1354_v24 = vld [vmem:[#allocation3 + $0x140] sm:$0xff]  ;;  %v1356_v25 = vld [vmem:[#allocation3 + $0x148] sm:$0xff]  ;;  %v1366_v30 = vld [vmem:[#allocation3 + $0x150] sm:$0xff]  ;;  %vm387_vm14 = vcmask 982912   ;;  %vm394_vm15 = vcmask 1048512  }
  0x1a   :  { %154 = vadd.xlane.f32.xlu1 %v153_v10  ;;  %1898 = vst [vmem:[#allocation13_spill] sm:$0xff] %v1354_v24  ;;  %1899 = vst [vmem:[#allocation14_spill] sm:$0xff] %v1356_v25  ;;  %v1358_v26 = vld [vmem:[#allocation3 + $0x40] sm:$0xff]  ;;  %v1360_v27 = vld [vmem:[#allocation3 + $0x48] sm:$0xff]  ;;  %v162_v28 = vadd.f32 %v1356_v25, %v1354_v24 }
  0x1b   :  { %106 = vadd.xlane.f32.xlu0 %v105_v11  ;;  %1900 = vst [vmem:[#allocation15_spill] sm:$0xff] %v1358_v26  ;;  %1901 = vst [vmem:[#allocation16_spill] sm:$0xff] %v1360_v27  ;;  %v114_v29 = vadd.f32 %v1360_v27, %v1358_v26  ;;  %v1368_v31 = vld [vmem:[#allocation3 + $0x158] sm:$0xff]  ;;  %v1370_v32 = vld [vmem:[#allocation3 + $0x50] sm:$0xff] }
  0x1c   :  { %1902 = vst [vmem:[#allocation17_spill] sm:$0xff] %v1366_v30  ;;  %1903 = vst [vmem:[#allocation18_spill] sm:$0xff] %v1368_v31  ;;  %v1372_v33 = vld [vmem:[#allocation3 + $0x58] sm:$0xff]  ;;  %v165_v34 = vadd.f32 %v1368_v31, %v1366_v30  ;;  %v1378_v36 = vld [vmem:[#allocation3 + $0x160] sm:$0xff] }
  0x1d   :  { %1904 = vst [vmem:[#allocation19_spill] sm:$0xff] %v1370_v32  ;;  %1905 = vst [vmem:[#allocation20_spill] sm:$0xff] %v1372_v33  ;;  %v117_v35 = vadd.f32 %v1372_v33, %v1370_v32  ;;  %v1380_v37 = vld [vmem:[#allocation3 + $0x168] sm:$0xff]  ;;  %v1382_v38 = vld [vmem:[#allocation3 + $0x60] sm:$0xff] }
  0x1e   :  { %157 = vadd.xlane.f32.xlu1 %v156_v16  ;;  %1906 = vst [vmem:[#allocation21_spill] sm:$0xff] %v1378_v36  ;;  %1907 = vst [vmem:[#allocation22_spill] sm:$0xff] %v1380_v37  ;;  %v1384_v39 = vld [vmem:[#allocation3 + $0x68] sm:$0xff]  ;;  %v168_v40 = vadd.f32 %v1380_v37, %v1378_v36  ;;  %v1390_v42 = vld [vmem:[#allocation3 + $0x170] sm:$0xff] }
  0x1f   :  { %109 = vadd.xlane.f32.xlu0 %v108_v17  ;;  %1908 = vst [vmem:[#allocation23_spill] sm:$0xff] %v1382_v38  ;;  %1909 = vst [vmem:[#allocation24_spill] sm:$0xff] %v1384_v39  ;;  %v120_v41 = vadd.f32 %v1384_v39, %v1382_v38  ;;  %v1392_v43 = vld [vmem:[#allocation3 + $0x178] sm:$0xff]  ;;  %v1394_v44 = vld [vmem:[#allocation3 + $0x70] sm:$0xff] }
  0x20   :  { %1910 = vst [vmem:[#allocation25_spill] sm:$0xff] %v1390_v42  ;;  %1911 = vst [vmem:[#allocation26_spill] sm:$0xff] %v1392_v43  ;;  %v1396_v45 = vld [vmem:[#allocation3 + $0x78] sm:$0xff]  ;;  %v171_v46 = vadd.f32 %v1392_v43, %v1390_v42  ;;  %v1402_v48 = vld [vmem:[#allocation3 + $0x180] sm:$0xff] }
  0x21   :  { %1912 = vst [vmem:[#allocation27_spill] sm:$0xff] %v1394_v44  ;;  %1913 = vst [vmem:[#allocation28_spill] sm:$0xff] %v1396_v45  ;;  %v123_v47 = vadd.f32 %v1396_v45, %v1394_v44  ;;  %v1404_v49 = vld [vmem:[#allocation3 + $0x188] sm:$0xff]  ;;  %v1406_v50 = vld [vmem:[#allocation3 + $0x80] sm:$0xff] }
  0x22   :  { %160 = vadd.xlane.f32.xlu1 %v159_v22  ;;  %1914 = vst [vmem:[#allocation29_spill] sm:$0xff] %v1402_v48  ;;  %1915 = vst [vmem:[#allocation30_spill] sm:$0xff] %v1404_v49  ;;  %v1408_v51 = vld [vmem:[#allocation3 + $0x88] sm:$0xff]  ;;  %v174_v52 = vadd.f32 %v1404_v49, %v1402_v48  ;;  %v1414_v54 = vld [vmem:[#allocation3 + $0x190] sm:$0xff] }
  0x23   :  { %112 = vadd.xlane.f32.xlu0 %v111_v23  ;;  %1916 = vst [vmem:[#allocation31_spill] sm:$0xff] %v1406_v50  ;;  %1917 = vst [vmem:[#allocation32_spill] sm:$0xff] %v1408_v51  ;;  %v126_v53 = vadd.f32 %v1408_v51, %v1406_v50  ;;  %v1416_v55 = vld [vmem:[#allocation3 + $0x198] sm:$0xff]  ;;  %v1418_v56 = vld [vmem:[#allocation3 + $0x90] sm:$0xff] }
  0x24   :  { %1918 = vst [vmem:[#allocation33_spill] sm:$0xff] %v1414_v54  ;;  %1919 = vst [vmem:[#allocation34_spill] sm:$0xff] %v1416_v55  ;;  %v1420_v57 = vld [vmem:[#allocation3 + $0x98] sm:$0xff]  ;;  %v177_v58 = vadd.f32 %v1416_v55, %v1414_v54  ;;  %v1426_v60 = vld [vmem:[#allocation3 + $0x1a0] sm:$0xff] }
  0x25   :  { %1920 = vst [vmem:[#allocation35_spill] sm:$0xff] %v1418_v56  ;;  %1921 = vst [vmem:[#allocation36_spill] sm:$0xff] %v1420_v57  ;;  %v129_v59 = vadd.f32 %v1420_v57, %v1418_v56  ;;  %v1428_v61 = vld [vmem:[#allocation3 + $0x1a8] sm:$0xff]  ;;  %v1430_v62 = vld [vmem:[#allocation3 + $0xa0] sm:$0xff] }
  0x26   :  { %163 = vadd.xlane.f32.xlu1 %v162_v28  ;;  %1922 = vst [vmem:[#allocation37_spill] sm:$0xff] %v1426_v60  ;;  %1923 = vst [vmem:[#allocation38_spill] sm:$0xff] %v1428_v61  ;;  %v1432_v63 = vld [vmem:[#allocation3 + $0xa8] sm:$0xff]  ;;  %v180_v3 = vadd.f32 %v1428_v61, %v1426_v60  ;;  %v1438_v10 = vld [vmem:[#allocation3 + $0x1b0] sm:$0xff] }
  0x27   :  { %115 = vadd.xlane.f32.xlu0 %v114_v29  ;;  %1924 = vst [vmem:[#allocation39_spill] sm:$0xff] %v1430_v62  ;;  %1925 = vst [vmem:[#allocation40_spill] sm:$0xff] %v1432_v63  ;;  %v132_v7 = vadd.f32 %v1432_v63, %v1430_v62  ;;  %v1440_v11 = vld [vmem:[#allocation3 + $0x1b8] sm:$0xff]  ;;  %v1442_v16 = vld [vmem:[#allocation3 + $0xb0] sm:$0xff] }
  0x28   :  { %1926 = vst [vmem:[#allocation41_spill] sm:$0xff] %v1438_v10  ;;  %1927 = vst [vmem:[#allocation42_spill] sm:$0xff] %v1440_v11  ;;  %v1444_v17 = vld [vmem:[#allocation3 + $0xb8] sm:$0xff]  ;;  %v183_v22 = vadd.f32 %v1440_v11, %v1438_v10  ;;  %v1450_v28 = vld [vmem:[#allocation3 + $0x1c0] sm:$0xff] }
  0x29   :  { %1928 = vst [vmem:[#allocation43_spill] sm:$0xff] %v1442_v16  ;;  %1929 = vst [vmem:[#allocation44_spill] sm:$0xff] %v1444_v17  ;;  %v135_v23 = vadd.f32 %v1444_v17, %v1442_v16  ;;  %v1452_v29 = vld [vmem:[#allocation3 + $0x1c8] sm:$0xff] }
  0x2a   :  { %166 = vadd.xlane.f32.xlu1 %v165_v34  ;;  %1930 = vst [vmem:[#allocation45_spill] sm:$0xff] %v1450_v28  ;;  %1931 = vst [vmem:[#allocation46_spill] sm:$0xff] %v1452_v29  ;;  %v1454_v34 = vld [vmem:[#allocation3 + $0xc0] sm:$0xff] }
  0x2b   :  { %118 = vadd.xlane.f32.xlu0 %v117_v35  ;;  %1932 = vst [vmem:[#allocation47_spill] sm:$0xff] %v1454_v34  ;;  %v1456_v35 = vld [vmem:[#allocation3 + $0xc8] sm:$0xff] }
  0x2c   :  { %1933 = vst [vmem:[#allocation48_spill] sm:$0xff] %v1456_v35 }
  0x2e   :  { %169 = vadd.xlane.f32.xlu1 %v168_v40  ;;  %v186_v40 = vadd.f32 %v1452_v29, %v1450_v28  ;;  %v1482_v28 = vld [vmem:[#allocation3 + $0x1e8] sm:$0xff]  ;;  %v1253_v29 = vmov 0.0|0.0  }
  0x2f   :  { %121 = vadd.xlane.f32.xlu0 %v120_v41  ;;  %v138_v41 = vadd.f32 %v1456_v35, %v1454_v34  ;;  %1939 = vst [vmem:[#allocation54_spill] sm:$0xff] %v1482_v28  ;;  %1082 = vmatprep.subr.bf16.mxu0 %v1253_v29  ;;  %v1484_v34 = vld [vmem:[#allocation3 + $0xe0] sm:$0xff]  ;;  %v1486_v35 = vld [vmem:[#allocation3 + $0xe8] sm:$0xff] }
  0x30   :  { %1940 = vst [vmem:[#allocation55_spill] sm:$0xff] %v1484_v34  ;;  %1941 = vst [vmem:[#allocation56_spill] sm:$0xff] %v1486_v35  ;;  %1106 = vmatprep.subr.bf16.mxu1 %v1253_v29 }
  0x32   :  { %172 = vadd.xlane.f32.xlu1 %v171_v46  ;;  %v1462_v46 = vld [vmem:[#allocation3 + $0x1d0] sm:$0xff] }
  0x33   :  { %124 = vadd.xlane.f32.xlu0 %v123_v47  ;;  %1934 = vst [vmem:[#allocation49_spill] sm:$0xff] %v1462_v46  ;;  %v1464_v47 = vld [vmem:[#allocation3 + $0x1d8] sm:$0xff] }
  0x34   :  { %1935 = vst [vmem:[#allocation50_spill] sm:$0xff] %v1464_v47 }
  0x36   :  { %175 = vadd.xlane.f32.xlu1 %v174_v52  ;;  %v1466_v52 = vld [vmem:[#allocation3 + $0xd0] sm:$0xff] }
  0x37   :  { %127 = vadd.xlane.f32.xlu0 %v126_v53  ;;  %1936 = vst [vmem:[#allocation51_spill] sm:$0xff] %v1466_v52  ;;  %v1468_v53 = vld [vmem:[#allocation3 + $0xd8] sm:$0xff] }
  0x38   :  { %1937 = vst [vmem:[#allocation52_spill] sm:$0xff] %v1468_v53 }
  0x3a   :  { %178 = vadd.xlane.f32.xlu1 %v177_v58  ;;  %v230_v58 = vld [vmem:[%s1834_s1] sm:$0xff] }
  0x3b   :  { %130 = vadd.xlane.f32.xlu0 %v129_v59  ;;  %v231_v59 = vld [vmem:[%s1834_s1 + $0x8] sm:$0xff] }
  0x3e   :  { %181 = vadd.xlane.f32.xlu1 %v180_v3  ;;  %v189_v3 = vadd.f32 %v1464_v47, %v1462_v46  ;;  %v144_v46 = vadd.f32 %v1486_v35, %v1484_v34  ;;  %v1500_v47 = vld [vmem:[#allocation3 + $0x1f8] sm:$0xff] }
  0x3f   :  { %133 = vadd.xlane.f32.xlu0 %v132_v7  ;;  %v1083_v7 = vpack.c.bf16 %v231_v59, %v230_v58  ;;  %1943 = vst [vmem:[#allocation58_spill] sm:$0xff] %v1500_v47  ;;  %v237_v34 = vld [vmem:[%s1834_s1 + $0x38] sm:$0xff] }
  0x41   :  { %1084 = vmatpush3.bf16.msra.mxu0 %v1083_v7  ;;  %v1498_v7 = vld [vmem:[#allocation3 + $0x1f0] sm:$0xff] }
  0x42   :  { %184 = vadd.xlane.f32.xlu1 %v183_v22  ;;  %v141_v22 = vadd.f32 %v1468_v53, %v1466_v52  ;;  %1085 = vmatprep.subr.bf16.mxu0 %v1253_v29  ;;  %1942 = vst [vmem:[#allocation57_spill] sm:$0xff] %v1498_v7  ;;  %v1502_v52 = vld [vmem:[#allocation3 + $0xf0] sm:$0xff]  ;;  %v1504_v53 = vld [vmem:[#allocation3 + $0xf8] sm:$0xff] }
  0x43   :  { %136 = vadd.xlane.f32.xlu0 %v135_v23  ;;  %v1480_v23 = vld [vmem:[#allocation3 + $0x1e0] sm:$0xff]  ;;  %1944 = vst [vmem:[#allocation59_spill] sm:$0xff] %v1502_v52  ;;  %1945 = vst [vmem:[#allocation60_spill] sm:$0xff] %v1504_v53 }
  0x44   :  { %1938 = vst [vmem:[#allocation53_spill] sm:$0xff] %v1480_v23  ;;  %v192_v58 = vadd.f32 %v1482_v28, %v1480_v23  ;;  %v147_v23 = vadd.f32 %v1504_v53, %v1502_v52 }
  0x46   :  { %187 = vadd.xlane.f32.xlu1 %v186_v40  ;;  %v232_v40 = vld [vmem:[%s1834_s1 + $0x10] sm:$0xff] }
  0x47   :  { %139 = vadd.xlane.f32.xlu0 %v138_v41  ;;  %v233_v41 = vld [vmem:[%s1834_s1 + $0x18] sm:$0xff] }
  0x48   :  { %v1086_v59 = vpack.c.bf16 %v233_v41, %v232_v40  ;;  %v195_v40 = vadd.f32 %v1500_v47, %v1498_v7 }
  0x4a   :  { %190 = vadd.xlane.f32.xlu1 %v189_v3  ;;  %1087 = vmatpush3.bf16.msra.mxu0 %v1086_v59  ;;  %v234_v3 = vld [vmem:[%s1834_s1 + $0x20] sm:$0xff]  ;;  %v236_v59 = vld [vmem:[%s1834_s1 + $0x30] sm:$0xff] }
  0x4b   :  { %142 = vadd.xlane.f32.xlu0 %v141_v22  ;;  %1088 = vmatprep.subr.bf16.mxu0 %v1253_v29  ;;  %v235_v22 = vld [vmem:[%s1834_s1 + $0x28] sm:$0xff] }
  0x4c   :  { %v1089_v41 = vpack.c.bf16 %v235_v22, %v234_v3  ;;  %v239_v3 = vld [vmem:[%s1834_s1 + $0x48] sm:$0xff] }
  0x4e   :  { %193 = vadd.xlane.f32.xlu1 %v192_v58  ;;  %1090 = vmatpush3.bf16.msra.mxu0 %v1089_v41  ;;  %v1092_v58 = vpack.c.bf16 %v237_v34, %v236_v59  ;;  %v240_v41 = vld [vmem:[%s1834_s1 + $0x50] sm:$0xff]  ;;  %v241_v34 = vld [vmem:[%s1834_s1 + $0x58] sm:$0xff]  ;;  %v243_v59 = vld [vmem:[%s1834_s1 + $0x68] sm:$0xff] }
  0x4f   :  { %145 = vadd.xlane.f32.xlu0 %v144_v46  ;;  %1091 = vmatprep.subr.bf16.mxu0 %v1253_v29  ;;  %v238_v46 = vld [vmem:[%s1834_s1 + $0x40] sm:$0xff] }
  0x50   :  { %v1095_v22 = vpack.c.bf16 %v239_v3, %v238_v46  ;;  %v244_v46 = vld [vmem:[%s1834_s1 + $0x70] sm:$0xff]  ;;  %v245_v3 = vld [vmem:[%s1834_s1 + $0x78] sm:$0xff] }
  0x52   :  { %196 = vadd.xlane.f32.xlu1 %v195_v40  ;;  %1093 = vmatpush3.bf16.msra.mxu0 %v1092_v58  ;;  %v242_v40 = vld [vmem:[%s1834_s1 + $0x60] sm:$0xff] }
  0x53   :  { %148 = vadd.xlane.f32.xlu0 %v147_v23  ;;  %1094 = vmatprep.subr.bf16.mxu0 %v1253_v29  ;;  %v1098_v23 = vpack.c.bf16 %v241_v34, %v240_v41  ;;  %v1101_v58 = vpack.c.bf16 %v243_v59, %v242_v40  ;;  %v1857_v41 = vmov 0.0  }
  0x54   :  { %1072 = vmatprep.mubr.msk.f32.mxu0 %vm1254_vm0, %v1857_v41  ;;  %1079 = vmatprep.mubr.msk.f32.mxu1 %vm1254_vm0, %v1857_v41  ;;  %vm475_vm0 = vcmask 1041409  }
  0x56   :  { %1096 = vmatpush3.bf16.msra.mxu0 %v1095_v22  ;;  %v1104_v22 = vpack.c.bf16 %v245_v3, %v244_v46 }
  0x57   :  { %1097 = vmatprep.subr.bf16.mxu0 %v1253_v29 }
  0x5a   :  { %1099 = vmatpush3.bf16.msra.mxu0 %v1098_v23 }
  0x5b   :  { %1100 = vmatprep.subr.bf16.mxu0 %v1253_v29 }
  0x5e   :  { %1102 = vmatpush3.bf16.msra.mxu0 %v1101_v58 }
  0x5f   :  { %1103 = vmatprep.subr.bf16.mxu0 %v1253_v29 }
  0x62   :  { %1105 = vmatpush3.bf16.msra.mxu0 %v1104_v22  ;;  %v285_v22 = vlaneseq }
  0x64   :  { %v286_v60 = vand.u32 127, %v285_v22  ;;  %v1558_v11 = vshrl.u32 %v285_v22, 7 }
  0x66   :  { %v291_v61 = vadd.s32 4294967288, %v286_v60  ;;  %v298_v16 = vadd.s32 4294967280, %v286_v60  ;;  %v305_v17 = vadd.s32 4294967272, %v286_v60  ;;  %v312_v63 = vadd.s32 4294967264, %v286_v60 }
  0x67   :  { %v319_v48 = vadd.s32 4294967256, %v286_v60  ;;  %v326_v55 = vadd.s32 4294967248, %v286_v60  ;;  %v333_v49 = vadd.s32 4294967240, %v286_v60  ;;  %v1565_v56 = vsub.s32 %v286_v60, %v1558_v11 }
  0x68   :  { %v340_v50 = vadd.s32 4294967232, %v286_v60  ;;  %v347_v57 = vadd.s32 4294967224, %v286_v60  ;;  %v354_v51 = vadd.s32 4294967216, %v286_v60  ;;  %v294_v22 = vsub.s32 %v291_v61, %v1558_v11 }
  0x69   :  { %v1569_v42 = vsub.s32 %v298_v16, %v1558_v11  ;;  %v361_v43 = vadd.s32 4294967208, %v286_v60  ;;  %v1574_v37 = vsub.s32 %v305_v17, %v1558_v11  ;;  %v1577_v44 = vsub.s32 %v312_v63, %v1558_v11 }
  0x6a   :  { %v368_v45 = vadd.s32 4294967200, %v286_v60  ;;  %v1582_v61 = vsub.s32 %v319_v48, %v1558_v11  ;;  %v1585_v16 = vsub.s32 %v326_v55, %v1558_v11  ;;  %v1588_v39 = vsub.s32 %v333_v49, %v1558_v11 }
  0x6b   :  { %v375_v30 = vadd.s32 4294967192, %v286_v60  ;;  %v1591_v17 = vsub.s32 %v340_v50, %v1558_v11  ;;  %v1594_v63 = vsub.s32 %v347_v57, %v1558_v11  ;;  %v1597_v31 = vsub.s32 %v354_v51, %v1558_v11 }
  0x6c   :  { %v1600_v32 = vsub.s32 %v361_v43, %v1558_v11  ;;  %v382_v49 = vadd.s32 4294967184, %v286_v60  ;;  %v1603_v50 = vsub.s32 %v368_v45, %v1558_v11  ;;  %v389_v43 = vadd.s32 4294967176, %v286_v60 }
  0x6d   :  { %v1606_v51 = vsub.s32 %v375_v30, %v1558_v11 }
  0x6e   :  { %v1611_v45 = vsub.s32 %v382_v49, %v1558_v11 }
  0xa3   :  { %v152_v34 = vpop.xlane.xlu1 %151 }
  0xa4   :  { %v104_v23 = vpop.xlane.xlu0 %103  ;;  %v214_v26 = vmul.f32 0.00390625, %v152_v34 }
  0xa5   :  { %v198_v57 = vmul.f32 0.00390625, %v104_v23 }
  0xa7   :  { %v155_v40 = vpop.xlane.xlu1 %154  ;;  %v290_v60 = vrot.slane %v198_v57, %v1565_v56 }
  0xa8   :  { %v107_v29 = vpop.xlane.xlu0 %106  ;;  %v215_v24 = vmul.f32 0.00390625, %v155_v40 }
  0xa9   :  { %v199_v48 = vmul.f32 0.00390625, %v107_v29 }
  0xaa   :  { %v403_v29 = vrot.slane %v215_v24, %v294_v22 }
  0xab   :  { %v158_v59 = vpop.xlane.xlu1 %157  ;;  %v295_v13 = vrot.slane %v199_v48, %v294_v22 }
  0xac   :  { %v110_v58 = vpop.xlane.xlu0 %109  ;;  %v216_v25 = vmul.f32 0.00390625, %v158_v59 }
  0xad   :  { %v200_v40 = vmul.f32 0.00390625, %v110_v58 }
  0xae   :  { %v408_v34 = vrot.slane %v216_v25, %v1569_v42 }
  0xaf   :  { %v161_v7 = vpop.xlane.xlu1 %160 }
  0xb0   :  { %v113_v52 = vpop.xlane.xlu0 %112  ;;  %v217_v33 = vmul.f32 0.00390625, %v161_v7 }
  0xb1   :  { %v201_v18 = vmul.f32 0.00390625, %v113_v52  ;;  %v399_v52 = vrot.slane %v214_v26, %v1565_v56 }
  0xb2   :  { %v413_v30 = vrot.slane %v217_v33, %v1574_v37  ;;  %v1625_v33 = vsub.s32 %v389_v43, %v1558_v11 }
  0xb3   :  { %v164_v47 = vpop.xlane.xlu1 %163  ;;  %v309_v25 = vrot.slane %v201_v18, %v1574_v37  ;;  %v404_v23 = vsel %vm296_vm1, %v403_v29, %v399_v52 }
  0xb4   :  { %v116_v28 = vpop.xlane.xlu0 %115  ;;  %v218_v12 = vmul.f32 0.00390625, %v164_v47  ;;  %v302_v47 = vrot.slane %v200_v40, %v1569_v42  ;;  %v409_v56 = vsel %vm303_vm2, %v408_v34, %v404_v23 }
  0xb5   :  { %v202_v59 = vmul.f32 0.00390625, %v116_v28 }
  0xb7   :  { %v167_v53 = vpop.xlane.xlu1 %166  ;;  %v316_v26 = vrot.slane %v202_v59, %v1577_v44 }
  0xb8   :  { %v1548_v35 = vpop.xlane.xlu0 %118  ;;  %v219_v19 = vmul.f32 0.00390625, %v167_v53 }
  0xb9   :  { %v203_v7 = vmul.f32 0.00390625, %v1548_v35  ;;  %v418_v35 = vrot.slane %v218_v12, %v1577_v44  ;;  %v414_v44 = vsel %vm310_vm3, %v413_v30, %v409_v56 }
  0xba   :  { %v423_v42 = vrot.slane %v219_v19, %v1582_v61 }
  0xbb   :  { %v1550_v46 = vpop.xlane.xlu1 %169  ;;  %v323_v18 = vrot.slane %v203_v7, %v1582_v61  ;;  %v419_v48 = vsel %vm317_vm4, %v418_v35, %v414_v44 }
  0xbc   :  { %v1552_v3 = vpop.xlane.xlu0 %121  ;;  %v220_v24 = vmul.f32 0.00390625, %v1550_v46  ;;  %v297_v46 = vsel %vm296_vm1, %v295_v13, %v290_v60  ;;  %v424_v40 = vsel %vm324_vm5, %v423_v42, %v419_v48  ;;  %vm558_vm1 = vcmask 130048  }
  0xbd   :  { %v204_v53 = vmul.f32 0.00390625, %v1552_v3  ;;  %v304_v3 = vsel %vm303_vm2, %v302_v47, %v297_v46 }
  0xbe   :  { %v428_v19 = vrot.slane %v220_v24, %v1585_v16  ;;  %v311_v13 = vsel %vm310_vm3, %v309_v25, %v304_v3 }
  0xbf   :  { %v1554_v10 = vpop.xlane.xlu1 %172  ;;  %v330_v61 = vrot.slane %v204_v53, %v1585_v16  ;;  %v318_v49 = vsel %vm317_vm4, %v316_v26, %v311_v13 }
  0xc0   :  { %v1556_v41 = vpop.xlane.xlu0 %124  ;;  %v221_v12 = vmul.f32 0.00390625, %v1554_v10 }
  0xc1   :  { %v205_v22 = vmul.f32 0.00390625, %v1556_v41  ;;  %v325_v41 = vsel %vm324_vm5, %v323_v18, %v318_v49 }
  0xc2   :  { %v433_v59 = vrot.slane %v221_v12, %v1588_v39 }
  0xc3   :  { %v1560_v62 = vpop.xlane.xlu1 %175  ;;  %v337_v7 = vrot.slane %v205_v22, %v1588_v39 }
  0xc4   :  { %v1562_v54 = vpop.xlane.xlu0 %127  ;;  %v222_v10 = vmul.f32 0.00390625, %v1560_v62  ;;  %v429_v62 = vsel %vm331_vm6, %v428_v19, %v424_v40 }
  0xc5   :  { %v206_v57 = vmul.f32 0.00390625, %v1562_v54  ;;  %v434_v53 = vsel %vm338_vm7, %v433_v59, %v429_v62 }
  0xc6   :  { %v438_v54 = vrot.slane %v222_v10, %v1591_v17 }
  0xc7   :  { %v1571_v36 = vpop.xlane.xlu1 %178  ;;  %v344_v25 = vrot.slane %v206_v57, %v1591_v17 }
  0xc8   :  { %v1579_v38 = vpop.xlane.xlu0 %130  ;;  %v223_v29 = vmul.f32 0.00390625, %v1571_v36  ;;  %v332_v36 = vsel %vm331_vm6, %v330_v61, %v325_v41  ;;  %v439_v56 = vsel %vm345_vm8, %v438_v54, %v434_v53  ;;  %v998_v54 = vld [vmem:[%s1835_s2] ss:$0 sm:$0xff]  ;;  %v1141_v53 = vpack.c.bf16 %v1318_v6, %v1308_v1  ;;  %v1949_v1 = vld [vmem:[#allocation9_spill] sm:$0xff]  ;;  %v1950_v6 = vld [vmem:[#allocation11_spill] sm:$0xff] }
  0xc9   :  { %v207_v43 = vmul.f32 0.00390625, %v1579_v38  ;;  %v339_v26 = vsel %vm338_vm7, %v337_v7, %v332_v36  ;;  %v550_v36 = vld [vmem:[%s1836_s3 + $0x8] sm:$0xff] }
  0xca   :  { %v443_v38 = vrot.slane %v223_v29, %v1594_v63  ;;  %1142 = vmatprep.subr.bf16.mxu0 %v1141_v53 }
  0xcb   :  { %v182_v55 = vpop.xlane.xlu1 %181  ;;  %v351_v39 = vrot.slane %v207_v43, %v1594_v63  ;;  %v346_v63 = vsel %vm345_vm8, %v344_v25, %v339_v26  ;;  %v1956_v26 = vld [vmem:[#allocation18_spill] sm:$0xff] }
  0xcc   :  { %v134_v27 = vpop.xlane.xlu0 %133  ;;  %v224_v34 = vmul.f32 0.00390625, %v182_v55  ;;  %v444_v3 = vsel %vm352_vm9, %v443_v38, %v439_v56  ;;  %v1959_v56 = vld [vmem:[#allocation24_spill] sm:$0xff] }
  0xcd   :  { %v208_v52 = vmul.f32 0.00390625, %v134_v27 }
  0xce   :  { %v448_v27 = vrot.slane %v224_v34, %v1597_v31 }
  0xcf   :  { %v185_v58 = vpop.xlane.xlu1 %184  ;;  %v358_v42 = vrot.slane %v208_v52, %v1597_v31  ;;  %v353_v31 = vsel %vm352_vm9, %v351_v39, %v346_v63  ;;  %v1700_v39 = vpack.c.bf16 %v1316_v5, %v1306_v0  ;;  %v1951_v0 = vld [vmem:[#allocation16_spill] sm:$0xff]  ;;  %v1962_v63 = vld [vmem:[#allocation27_spill] sm:$0xff] }
  0xd0   :  { %v137_v28 = vpop.xlane.xlu0 %136  ;;  %v225_v47 = vmul.f32 0.00390625, %v185_v58  ;;  %v449_v22 = vsel %vm359_vm10, %v448_v27, %v444_v3  ;;  %v1113_v27 = vpack.c.bf16 %v1348_v21, %v1336_v15  ;;  %v1952_v5 = vld [vmem:[#allocation20_spill] sm:$0xff]  ;;  %v1953_v21 = vld [vmem:[#allocation15_spill] sm:$0xff] }
  0xd1   :  { %v209_v24 = vmul.f32 0.00390625, %v137_v28  ;;  %v360_v48 = vsel %vm359_vm10, %v358_v42, %v353_v31  ;;  %v1117_v15 = vpack.c.bf16 %v1952_v5, %v1951_v0  ;;  %v1991_v5 = vld [vmem:[#allocation56_spill] sm:$0xff] }
  0xd2   :  { %v453_v28 = vrot.slane %v225_v47, %v1600_v32  ;;  %v1946_v47 = vmov 0.0  }
  0xd3   :  { %v188_v37 = vpop.xlane.xlu1 %187  ;;  %v365_v18 = vrot.slane %v209_v24, %v1600_v32 }
  0xd4   :  { %v140_v11 = vpop.xlane.xlu0 %139  ;;  %v226_v60 = vmul.f32 0.00390625, %v188_v37  ;;  %v454_v61 = vsel %vm366_vm11, %v453_v28, %v449_v22  ;;  %v1957_v28 = vld [vmem:[#allocation13_spill] sm:$0xff] }
  0xd5   :  { %v210_v55 = vmul.f32 0.00390625, %v140_v11  ;;  %v1965_v22 = vld [vmem:[#allocation21_spill] sm:$0xff] }
  0xd6   :  { %v458_v12 = vrot.slane %v226_v60, %v1603_v50 }
  0xd7   :  { %v191_v16 = vpop.xlane.xlu1 %190  ;;  %v372_v44 = vrot.slane %v210_v55, %v1603_v50  ;;  %v367_v50 = vsel %vm366_vm11, %v365_v18, %v360_v48  ;;  %v1109_v55 = vpack.c.bf16 %v1324_v9, %v1314_v4  ;;  %v1115_v4 = vpack.c.bf16 %v1346_v20, %v1334_v14  ;;  %v1947_v9 = vld [vmem:[#allocation10_spill] sm:$0xff]  ;;  %v1960_v18 = vld [vmem:[#allocation28_spill] sm:$0xff] }
  0xd8   :  { %v143_v30 = vpop.xlane.xlu0 %142  ;;  %v227_v35 = vmul.f32 0.00390625, %v191_v16  ;;  %v459_v57 = vsel %vm373_vm12, %v458_v12, %v454_v61  ;;  %v1955_v20 = vld [vmem:[#allocation14_spill] sm:$0xff]  ;;  %v1121_v12 = vpack.c.bf16 %v1960_v18, %v1959_v56  ;;  %v1968_v48 = vld [vmem:[#allocation36_spill] sm:$0xff]  ;;  %v1997_v56 = vld [vmem:[#allocation53_spill] sm:$0xff] }
  0xd9   :  { %v211_v58 = vmul.f32 0.00390625, %v143_v30  ;;  %v374_v41 = vsel %vm373_vm12, %v372_v44, %v367_v50  ;;  %v549_v30 = vld [vmem:[%s1836_s3] sm:$0xff]  ;;  %v1723_v42 = vpack.c.bf16 %v1956_v26, %v1955_v20  ;;  %v1963_v44 = vld [vmem:[#allocation22_spill] sm:$0xff]  ;;  %v1995_v26 = vld [vmem:[#allocation55_spill] sm:$0xff] }
  0xda   :  { %v463_v19 = vrot.slane %v227_v35, %v1606_v51  ;;  %v1111_v35 = vpack.c.bf16 %v1322_v8, %v1310_v2  ;;  %v1948_v2 = vld [vmem:[#allocation12_spill] sm:$0xff]  ;;  %v1971_v50 = vld [vmem:[#allocation30_spill] sm:$0xff]  ;;  %v1998_v18 = vld [vmem:[#allocation57_spill] sm:$0xff] }
  0xdb   :  { %v194_v23 = vpop.xlane.xlu1 %193  ;;  %v379_v11 = vrot.slane %v211_v58, %v1606_v51  ;;  %v1709_v8 = vpack.c.bf16 %v1948_v2, %v1947_v9  ;;  %v1713_v58 = vpack.c.bf16 %v1950_v6, %v1949_v1  ;;  %v1988_v9 = vld [vmem:[#allocation50_spill] sm:$0xff]  ;;  %v1989_v1 = vld [vmem:[#allocation45_spill] sm:$0xff] }
  0xdc   :  { %v228_v46 = vmul.f32 0.00390625, %v194_v23  ;;  %v146_v17 = vpop.xlane.xlu0 %145  ;;  %v464_v51 = vsel %vm380_vm13, %v463_v19, %v459_v57  ;;  %v1954_v23 = vld [vmem:[#allocation19_spill] sm:$0xff]  ;;  %v1964_v19 = vld [vmem:[#allocation26_spill] sm:$0xff]  ;;  %v1990_v6 = vld [vmem:[#allocation49_spill] sm:$0xff] }
  0xdd   :  { %v212_v37 = vmul.f32 0.00390625, %v146_v17  ;;  %v381_v43 = vsel %vm380_vm13, %v379_v11, %v374_v41  ;;  %v1119_v14 = vpack.c.bf16 %v1954_v23, %v1953_v21  ;;  %v1737_v31 = vpack.c.bf16 %v1964_v19, %v1963_v44  ;;  %v1966_v11 = vld [vmem:[#allocation25_spill] sm:$0xff]  ;;  %v1972_v57 = vld [vmem:[#allocation34_spill] sm:$0xff] }
  0xde   :  { %v468_v13 = vrot.slane %v228_v46, %v1611_v45  ;;  %v1958_v46 = vld [vmem:[#allocation17_spill] sm:$0xff]  ;;  %v1167_v0 = vpack.c.bf16 %v1990_v6, %v1989_v1  ;;  %v1993_v23 = vld [vmem:[#allocation54_spill] sm:$0xff] }
  0xdf   :  { %v197_v32 = vpop.xlane.xlu1 %196  ;;  %v386_v10 = vrot.slane %v212_v37, %v1611_v45  ;;  %v1727_v17 = vpack.c.bf16 %v1958_v46, %v1957_v28  ;;  %v1961_v37 = vld [vmem:[#allocation23_spill] sm:$0xff]  ;;  %v1973_v41 = vld [vmem:[#allocation29_spill] sm:$0xff] }
  0xe0   :  { %v229_v49 = vmul.f32 0.00390625, %v197_v32  ;;  %v149_v40 = vpop.xlane.xlu0 %148  ;;  %v469_v45 = vsel %vm387_vm14, %v468_v13, %v464_v51  ;;  %v1123_v3 = vpack.c.bf16 %v1962_v63, %v1961_v37  ;;  %v1741_v13 = vpack.c.bf16 %v1966_v11, %v1965_v22  ;;  %v1967_v32 = vld [vmem:[#allocation32_spill] sm:$0xff]  ;;  %v1974_v51 = vld [vmem:[#allocation33_spill] sm:$0xff]  ;;  %v1996_v28 = vld [vmem:[#allocation59_spill] sm:$0xff] }
  0xe1   :  { %v213_v29 = vmul.f32 0.00390625, %v149_v40  ;;  %v388_v16 = vsel %vm387_vm14, %v386_v10, %v381_v43  ;;  %v1125_v61 = vpack.c.bf16 %v1968_v48, %v1967_v32  ;;  %v1969_v10 = vld [vmem:[#allocation31_spill] sm:$0xff]  ;;  %v1975_v43 = vld [vmem:[#allocation40_spill] sm:$0xff]  ;;  %v1139_v46 = vpack.c.bf16 %v1996_v28, %v1995_v26 }
  0xe2   :  { %v473_v59 = vrot.slane %v229_v49, %v1625_v33  ;;  %v1970_v49 = vld [vmem:[#allocation35_spill] sm:$0xff]  ;;  %v999_v37 = vld [vmem:[%s1837_s4] ss:$0 sm:$0xff] }
  0xe3   :  { %v393_v34 = vrot.slane %v213_v29, %v1625_v33  ;;  %v1107_v33 = vpack.c.bf16 %v550_v36, %v549_v30  ;;  %v1127_v40 = vpack.c.bf16 %v1970_v49, %v1969_v10  ;;  %v1751_v29 = vpack.c.bf16 %v1972_v57, %v1971_v50  ;;  %v1980_v30 = vld [vmem:[#allocation42_spill] sm:$0xff]  ;;  %v640_v48 = vld [vmem:[%s1838_s5] sm:$0xff] }
  0xe4   :  { %v474_v62 = vsel %vm394_vm15, %v473_v59, %v469_v45  ;;  %v1755_v59 = vpack.c.bf16 %v1974_v51, %v1973_v41  ;;  %v642_v41 = vld [vmem:[%s1838_s5 + $0x10] sm:$0xff]  ;;  %v643_v51 = vld [vmem:[%s1838_s5 + $0x18] sm:$0xff] }
  0xe5   :  { %v395_v7 = vsel %vm394_vm15, %v393_v34, %v388_v16  ;;  %1108 = vmatpush3.bf16.msra.mxu1 %v1107_v33  ;;  %v1976_v34 = vld [vmem:[#allocation44_spill] sm:$0xff]  ;;  %v1977_v16 = vld [vmem:[#allocation39_spill] sm:$0xff]  ;;  %v1981_v33 = vld [vmem:[#allocation37_spill] sm:$0xff] }
  0xe6   :  { %v476_v52 = vsel %vm475_vm0, %v474_v62, %v395_v7  ;;  %1110 = vmatprep.subr.bf16.mxu1 %v1109_v55  ;;  %v1129_v45 = vpack.c.bf16 %v1976_v34, %v1975_v43  ;;  %v1978_v62 = vld [vmem:[#allocation43_spill] sm:$0xff] }
  0xe7   :  { %1073 = vmatmul.mubr.f32.vlgmr.msra.gmra.mrb[0].mxu0 %v476_v52  ;;  %v1131_v7 = vpack.c.bf16 %v1978_v62, %v1977_v16  ;;  %v1979_v52 = vld [vmem:[#allocation38_spill] sm:$0xff]  ;;  %v1985_v55 = vld [vmem:[#allocation47_spill] sm:$0xff] }
  0xe8   :  { %919 = vmatprep.mubr.f32.mxu0 %v1946_v47  ;;  %1144 = vmatpush1.bf16.msra.mxu0 %v1700_v39  ;;  %v1765_v36 = vpack.c.bf16 %v1980_v30, %v1979_v52 }
  0xe9   :  { %1146 = vmatprep.subr.bf16.mxu0 %v1709_v8 }
  0xec   :  { %1148 = vmatpush1.bf16.msra.mxu0 %v1713_v58 }
  0xed   :  { %1150 = vmatprep.subr.bf16.mxu0 %v1723_v42 }
  0xf0   :  { %1152 = vmatpush1.bf16.msra.mxu0 %v1727_v17 }
  0xf1   :  { %1154 = vmatprep.subr.bf16.mxu0 %v1737_v31 }
  0xf4   :  { %1156 = vmatpush1.bf16.msra.mxu0 %v1741_v13 }
  0xf5   :  { %1158 = vmatprep.subr.bf16.mxu0 %v1751_v29 }
  0xf8   :  { %1160 = vmatpush1.bf16.msra.mxu0 %v1755_v59 }
  0xf9   :  { %1162 = vmatprep.subr.bf16.mxu0 %v1765_v36 }
 0x1ba   :  { %v544_v24 = vpop.f32.mrb[0].mxu0 }
 0x1bb   :  { %v545_v60 = vadd.f32 %v998_v54, %v544_v24  ;;  %v1074_v25 = vpop.f32.mrb[1].mxu0  ;;  %v1982_v54 = vld [vmem:[#allocation41_spill] sm:$0xff] }
 0x1bc   :  { %v1769_v24 = vpack.c.bf16 %v1982_v54, %v1981_v33  ;;  %v1984_v25 = vld [vmem:[#allocation52_spill] sm:$0xff] }
 0x1bd   :  { %v548_v38 = vmax.f32 %v545_v60, 0.0  ;;  %v1983_v60 = vld [vmem:[#allocation48_spill] sm:$0xff] }
 0x1be   :  { %1164 = vmatpush1.bf16.msra.mxu0 %v1769_v24 }
 0x1bf   :  { %1080 = vmatmul.mubr.msk.f32.vlgmr.msra.gmra.mrb[0].mxu1 %vm558_vm1, %v548_v38  ;;  %v1133_v38 = vpack.c.bf16 %v1984_v25, %v1983_v60 }
 0x1c0   :  { %748 = vmatprep.mubr.f32.mxu1 %v1946_v47  ;;  %1112 = vmatpush1.bf16.msra.mxu1 %v1111_v35  ;;  %v1986_v35 = vld [vmem:[#allocation51_spill] sm:$0xff] }
 0x1c1   :  { %1114 = vmatprep.subr.bf16.mxu1 %v1113_v27  ;;  %v1135_v27 = vpack.c.bf16 %v1986_v35, %v1985_v55 }
 0x1c4   :  { %1116 = vmatpush1.bf16.msra.mxu1 %v1115_v4  ;;  %v1987_v4 = vld [vmem:[#allocation46_spill] sm:$0xff] }
 0x1c5   :  { %1118 = vmatprep.subr.bf16.mxu1 %v1117_v15  ;;  %v1165_v2 = vpack.c.bf16 %v1988_v9, %v1987_v4  ;;  %v1992_v15 = vld [vmem:[#allocation60_spill] sm:$0xff] }
 0x1c6   :  { %v1137_v21 = vpack.c.bf16 %v1992_v15, %v1991_v5 }
 0x1c7   :  { %1166 = vmatprep.subr.bf16.mxu0 %v1165_v2 }
 0x1c8   :  { %1120 = vmatpush1.bf16.msra.mxu1 %v1119_v14  ;;  %v1994_v14 = vld [vmem:[#allocation58_spill] sm:$0xff]  ;;  %1168 = vmatpush1.bf16.msra.mxu0 %v1167_v0 }
 0x1c9   :  { %1122 = vmatprep.subr.bf16.mxu1 %v1121_v12  ;;  %v1169_v20 = vpack.c.bf16 %v1994_v14, %v1993_v23  ;;  %v1171_v12 = vpack.c.bf16 %v1998_v18, %v1997_v56 }
 0x1cb   :  { %1170 = vmatprep.subr.bf16.mxu0 %v1169_v20 }
 0x1cc   :  { %1124 = vmatpush1.bf16.msra.mxu1 %v1123_v3  ;;  %1172 = vmatpush1.bf16.msra.mxu0 %v1171_v12 }
 0x1cd   :  { %1126 = vmatprep.subr.bf16.mxu1 %v1125_v61 }
 0x1d0   :  { %1128 = vmatpush1.bf16.msra.mxu1 %v1127_v40  ;;  %v641_v40 = vld [vmem:[%s1838_s5 + $0x8] sm:$0xff]  ;;  %s1256_s5 = smov [#allocation6]  }
 0x1d1   :  { %1130 = vmatprep.subr.bf16.mxu1 %v1129_v45  ;;  %s986_s29 = sshll.u32 %s1256_s5, 4  ;;  %s987_s29 = int_to_ptr.vmem [resolvable:$true] %s986_s29 }
 0x1d2   :  { %s1224_s30 = scalar_lea.vmem %s987_s29, 1024  ;;  %p1229_p9 = scmp.lt.s32.totalorder %s987_s29, %s987_s29 }
 0x1d3   :  { %p1225_p8 = scmp.ne.s32.totalorder %s987_s29, %s1224_s30  ;;  %p1230_p10 = scmp.lt.s32.totalorder %s1224_s30, %s1224_s30 }
 0x1d4   :  { %1132 = vmatpush1.bf16.msra.mxu1 %v1131_v7 }
 0x1d5   :  { %1134 = vmatprep.subr.bf16.mxu1 %v1133_v38  ;;  %p1231_p11 = por %p1230_p10, %p1229_p9 }
 0x1d7   :  { %p1232_p12 = pnand %p1231_p11, %p1225_p8 }
 0x1d8   :  { %1136 = vmatpush1.bf16.msra.mxu1 %v1135_v27 }
 0x1d9   :  { %1138 = vmatprep.subr.bf16.mxu1 %v1137_v21 }
 0x1dc   :  { %1140 = vmatpush1.bf16.msra.mxu1 %v1139_v46 }
 0x1dd   :  { %1173 = vmatprep.subr.bf16.mxu1 %v1141_v53 }
 0x292   :  { %v628_v63 = vpop.f32.mrb[0].mxu1 }
 0x293   :  { %v629_v3 = vadd.f32 %v999_v37, %v628_v63  ;;  %v1081_v44 = vpop.f32.mrb[1].mxu1 }
 0x295   :  { %v1001_v19 = vmul.f32 -1.442695, %v629_v3 }
 0x297   :  { %1198 = vpow2.f32 %v1001_v19 }
 0x2a1   :  { %v1199_v22 = vpop.eup %1198 }
 0x2a2   :  { %v635_v11 = vadd.f32 1.0, %v1199_v22 }
 0x2a4   :  { %1200 = vrcp.f32 %v635_v11 }
 0x2ae   :  { %v1201_v32 = vpop.eup %1200 }
 0x2af   :  { %638 = vst [vmem:[#allocation2] sm:$0x3] %v1201_v32 }
 0x2b6   :  { %v1002_v61 = vld [vmem:[#allocation2] ss:$0 sm:$0xff]  ;;  %v1007_v53 = vld [vmem:[#allocation2 + $0x1] ss:$0 sm:$0xff] }
 0x2b7   :  { %v648_v10 = vmul.f32 %v1002_v61, %v640_v48  ;;  %v818_v49 = vmul.f32 %v1007_v53, %v640_v48  ;;  %v649_v50 = vmul.f32 %v1002_v61, %v641_v40  ;;  %v819_v57 = vmul.f32 %v1007_v53, %v641_v40 }
 0x2b9   :  { %749 = vmatmul.mubr.f32.vlgmr.msra.gmra.mrb[2].mxu1 %v648_v10  ;;  %920 = vmatmul.mubr.f32.vlgmr.msra.gmra.mrb[2].mxu0 %v818_v49 }
 0x2ba   :  { %1181 = vmatpush1.bf16.msra.mxu1 %v1700_v39  ;;  %754 = vmatprep.mubr.f32.mxu1 %v1946_v47  ;;  %v650_v39 = vmul.f32 %v1002_v61, %v642_v41 }
 0x2bb   :  { %1174 = vmatprep.subr.bf16.mxu1 %v1709_v8  ;;  %925 = vmatprep.mubr.f32.mxu0 %v1946_v47  ;;  %v820_v8 = vmul.f32 %v1007_v53, %v642_v41 }
 0x2bd   :  { %755 = vmatmul.mubr.f32.gmra.mrb[4].mxu1 %v649_v50  ;;  %926 = vmatmul.mubr.f32.gmra.mrb[4].mxu0 %v819_v57 }
 0x2be   :  { %1182 = vmatpush1.bf16.msra.mxu1 %v1713_v58  ;;  %760 = vmatprep.mubr.f32.mxu1 %v1946_v47  ;;  %v651_v58 = vmul.f32 %v1002_v61, %v643_v51 }
 0x2bf   :  { %1175 = vmatprep.subr.bf16.mxu1 %v1723_v42  ;;  %931 = vmatprep.mubr.f32.mxu0 %v1946_v47  ;;  %v821_v42 = vmul.f32 %v1007_v53, %v643_v51 }
 0x2c1   :  { %761 = vmatmul.mubr.f32.gmra.mrb[6].mxu1 %v650_v39  ;;  %932 = vmatmul.mubr.f32.gmra.mrb[6].mxu0 %v820_v8 }
 0x2c2   :  { %1183 = vmatpush1.bf16.msra.mxu1 %v1727_v17  ;;  %766 = vmatprep.mubr.f32.mxu1 %v1946_v47 }
 0x2c3   :  { %1176 = vmatprep.subr.bf16.mxu1 %v1737_v31 }
 0x2c5   :  { %767 = vmatmul.mubr.f32.gmra.mrb[8].mxu1 %v651_v58 }
 0x2c6   :  { %1184 = vmatpush1.bf16.msra.mxu1 %v1741_v13  ;;  %937 = vmatprep.mubr.f32.mxu1 %v1946_v47 }
 0x2c7   :  { %1177 = vmatprep.subr.bf16.mxu1 %v1751_v29 }
 0x2ca   :  { %1185 = vmatpush1.bf16.msra.mxu1 %v1755_v59 }
 0x2cb   :  { %1178 = vmatprep.subr.bf16.mxu1 %v1765_v36 }
 0x2ce   :  { %1186 = vmatpush1.bf16.msra.mxu1 %v1769_v24 }
 0x2cf   :  { %1179 = vmatprep.subr.bf16.mxu1 %v1165_v2 }
 0x2d2   :  { %1187 = vmatpush1.bf16.msra.mxu1 %v1167_v0 }
 0x2d3   :  { %1180 = vmatprep.subr.bf16.mxu1 %v1169_v20 }
 0x2d6   :  { %1188 = vmatpush1.bf16.msra.mxu1 %v1171_v12 }
 0x2d9   :  { %938 = vmatmul.mubr.f32.vlgmr.msra.gmra.mrb[10].mxu1 %v821_v42 }
 0x38c   :  { %v750_v17 = vpop.f32.mrb[2].mxu1  ;;  %v921_v31 = vpop.f32.mrb[2].mxu0 }
 0x38d   :  { %v773_v43 = vmax.f32 %v750_v17, 0.0  ;;  %v944_v13 = vmax.f32 %v921_v31, 0.0  ;;  %v752_v34 = vpop.f32.mrb[3].mxu1  ;;  %v923_v47 = vpop.f32.mrb[3].mxu0 }
 0x38e   :  { %v774_v45 = vmax.f32 %v752_v34, 0.0  ;;  %v945_v29 = vmax.f32 %v923_v47, 0.0 }
 0x390   :  { %v1012_v16 = vpack.c.bf16 %v774_v45, %v773_v43  ;;  %v1016_v59 = vpack.c.bf16 %v945_v29, %v944_v13  ;;  %v756_v62 = vpop.f32.mrb[4].mxu1  ;;  %v927_v7 = vpop.f32.mrb[4].mxu0 }
 0x391   :  { %v775_v52 = vmax.f32 %v756_v62, 0.0  ;;  %v946_v30 = vmax.f32 %v927_v7, 0.0  ;;  %v758_v36 = vpop.f32.mrb[5].mxu1  ;;  %v929_v33 = vpop.f32.mrb[5].mxu0 }
 0x392   :  { %805 = vst [vmem:[#allocation6] sm:$0xff] %v1012_v16  ;;  %977 = vst [vmem:[#allocation6 + $0x20] sm:$0xff] %v1016_v59  ;;  %v776_v54 = vmax.f32 %v758_v36, 0.0  ;;  %v947_v24 = vmax.f32 %v929_v33, 0.0 }
 0x394   :  { %v1013_v60 = vpack.c.bf16 %v776_v54, %v775_v52  ;;  %v1017_v25 = vpack.c.bf16 %v947_v24, %v946_v30  ;;  %v762_v38 = vpop.f32.mrb[6].mxu1  ;;  %v933_v55 = vpop.f32.mrb[6].mxu0 }
 0x395   :  { %v777_v35 = vmax.f32 %v762_v38, 0.0  ;;  %v948_v27 = vmax.f32 %v933_v55, 0.0  ;;  %v764_v4 = vpop.f32.mrb[7].mxu1  ;;  %v935_v9 = vpop.f32.mrb[7].mxu0 }
 0x396   :  { %806 = vst [vmem:[#allocation6 + $0x8] sm:$0xff] %v1013_v60  ;;  %978 = vst [vmem:[#allocation6 + $0x28] sm:$0xff] %v1017_v25  ;;  %v778_v2 = vmax.f32 %v764_v4, 0.0  ;;  %v949_v1 = vmax.f32 %v935_v9, 0.0 }
 0x398   :  { %v1014_v6 = vpack.c.bf16 %v778_v2, %v777_v35  ;;  %v1018_v0 = vpack.c.bf16 %v949_v1, %v948_v27  ;;  %v768_v5 = vpop.f32.mrb[8].mxu1 }
 0x399   :  { %v779_v15 = vmax.f32 %v768_v5, 0.0  ;;  %v770_v21 = vpop.f32.mrb[9].mxu1 }
 0x39a   :  { %807 = vst [vmem:[#allocation6 + $0x10] sm:$0xff] %v1014_v6  ;;  %979 = vst [vmem:[#allocation6 + $0x30] sm:$0xff] %v1018_v0  ;;  %v780_v23 = vmax.f32 %v770_v21, 0.0 }
 0x39c   :  { %v1015_v14 = vpack.c.bf16 %v780_v23, %v779_v15 }
 0x39e   :  { %808 = vst [vmem:[#allocation6 + $0x18] sm:$0xff] %v1015_v14 }
 0x3ac   :  { %v939_v20 = vpop.f32.mrb[10].mxu1 }
 0x3ad   :  { %v950_v26 = vmax.f32 %v939_v20, 0.0  ;;  %v941_v28 = vpop.f32.mrb[11].mxu1 }
 0x3ae   :  { %v951_v46 = vmax.f32 %v941_v28, 0.0 }
 0x3b0   :  { %v1019_v56 = vpack.c.bf16 %v951_v46, %v950_v26 }
 0x3b2   :  { %980 = vst [vmem:[#allocation6 + $0x38] sm:$0xff] %v1019_v56 }
 0x3b3   :  { %1235 = shalt.err (!%p1232_p12)
}
 0x3b4   :  { %s1236_s9 = scalar_lea.hbm %s1839_s6, 1024 }
 0x3b5   :  { %p1237_p13 = scmp.ne.s32.totalorder %s1839_s6, %s1236_s9  ;;  %p1240_p0 = scmp.lt.u32.totalorder %s1236_s9, %s1839_s6 }
 0x3b7   :  { %p1242_p1 = pnand %p1240_p0, %p1237_p13 }
 0x3b9   :  { %1245 = shalt.err (!%p1242_p1)
}
 0x3ba   :  { %s1257_s13 = smov 128   ;;  %s1258_s14 = smov 8  }
 0x3bb   :  { %992 = dma.vmem_to_hbm [thread:$0]  %s987_s29, 1024, %s1839_s6, [#allocation5], %s1257_s13, %s1257_s13, %s1258_s14  }
 0x3bc   :  { %1248 = dma.done.wait [#allocation5], 1024  }
 0x3bd   :  { %1249 = vsyncadd [#allocation5], 4294966272 }
 0x3be   :  { %996 = vsyncpa [#allocation4], 1 }
 0x3bf   :  { %997 = vsyncpa [#allocation5], 1 }

</bundles_post_ra>
